<compile_context>
chip_gen: v5e
topology: v5e:2x2
jax: 0.10.0
libtpu: 0.0.40
codegen_flags: <defaults>
</compile_context>

<pallas_src>
import math

import jax
import jax.numpy as jnp
from jax.experimental import pallas as pl
from jax.experimental.pallas import tpu as pltpu

d_k = d_v = 64
d_model = 512
n_heads = 8

_HEADS_PER_BLOCK = 2          # 2 heads -> 128-wide lane tiles for q/k/v/ctx
_NEG_INF = -1.0e9             # matches scores.masked_fill_(attn_mask, -1e9)
_LN_EPS = 1e-5                # nn.LayerNorm default


def _pick_tile(dim, candidates):
    for c in candidates:
        if c <= dim and dim % c == 0:
            return c
    return dim


# ---------------------------------------------------------------------------
# Kernel 1: tiled y = x @ W   (x: [M, K] f32 activations, W: [K, N] bf16)
# ---------------------------------------------------------------------------
def _matmul_kernel(x_ref, w_ref, o_ref, acc_ref):
    @pl.when(pl.program_id(2) == 0)
    def _():
        acc_ref[...] = jnp.zeros_like(acc_ref)

    acc_ref[...] += jnp.dot(
        x_ref[...].astype(jnp.bfloat16),   # weights are already bf16 in HBM
        w_ref[...],
        preferred_element_type=jnp.float32,
    )

    @pl.when(pl.program_id(2) == pl.num_programs(2) - 1)
    def _():
        o_ref[...] = acc_ref[...].astype(o_ref.dtype)


def pallas_matmul(x, w, out_dtype=jnp.bfloat16):
    M, K = x.shape
    K2, N = w.shape
    assert K == K2
    tm = _pick_tile(M, (256, 128, 64, 32, 16, 8))
    tn = _pick_tile(N, (512, 256, 128))
    tk = _pick_tile(K, (512, 256, 128))
    return pl.pallas_call(
        _matmul_kernel,
        out_shape=jax.ShapeDtypeStruct((M, N), out_dtype),
        grid=(M // tm, N // tn, K // tk),
        in_specs=[
            pl.BlockSpec((tm, tk), lambda i, j, k: (i, k)),
            pl.BlockSpec((tk, tn), lambda i, j, k: (k, j)),
        ],
        out_specs=pl.BlockSpec((tm, tn), lambda i, j, k: (i, j)),
        scratch_shapes=[pltpu.VMEM((tm, tn), jnp.float32)],
        compiler_params=pltpu.CompilerParams(
            dimension_semantics=("parallel", "parallel", "arbitrary"),
        ),
    )(x, w)


# ---------------------------------------------------------------------------
# Kernel 2: scaled dot-product attention
#   grid = (batch, head-pair, q-tile), q-tile innermost so K/V DMAs are reused.
# ---------------------------------------------------------------------------
def _attn_kernel(q_ref, k_ref, v_ref, m_ref, ctx_ref, attn_ref):
    # q_ref:   [tq,   2*d_k]  bf16 (two heads packed on the lane axis)
    # k_ref:   [S_kv, 2*d_k]  bf16
    # v_ref:   [S_kv, 2*d_v]  bf16
    # m_ref:   [tq,   S_kv]   int8 (nonzero == masked), shared by all heads
    # ctx_ref: [tq,   2*d_v]  bf16 -> lands directly in [B, S, H*d_v]
    # attn_ref:[2, tq, S_kv]  bf16
    maskf = m_ref[...].astype(jnp.float32)   # hoisted: shared by both heads
    big_neg = jnp.float32(_NEG_INF)

    for h in range(_HEADS_PER_BLOCK):
        q_h = q_ref[:, h * d_k:(h + 1) * d_k]      # 1/sqrt(d_k) folded into W_Q
        k_h = k_ref[:, h * d_k:(h + 1) * d_k]
        v_h = v_ref[:, h * d_v:(h + 1) * d_v]

        # scores = q @ k.T  (contract d_k with d_k), f32 accumulation on MXU
        scores = jax.lax.dot_general(
            q_h, k_h, (((1,), (1,)), ((), ())),
            preferred_element_type=jnp.float32)
        scores = jnp.where(maskf != 0.0, big_neg, scores)

        m_max = jnp.max(scores, axis=-1, keepdims=True)
        e = jnp.exp(scores - m_max)
        denom = jnp.sum(e, axis=-1, keepdims=True)
        attn = e * pl.reciprocal(denom, approx=True)   # EUP, no VALU divide

        attn_ref[h] = attn.astype(attn_ref.dtype)
        ctx = jnp.dot(attn.astype(jnp.bfloat16), v_h,
                      preferred_element_type=jnp.float32)
        ctx_ref[:, h * d_v:(h + 1) * d_v] = ctx.astype(ctx_ref.dtype)


def pallas_attention(q_src, k_src, v_src, mask_i8, *, q_off, k_off, v_off,
                     attn_dtype=jnp.bfloat16):
    """q_src/k_src/v_src: [B, S, C] bf16 tensors; head-pair hp of Q/K/V lives at
    column-block (q_off+hp) / (k_off+hp) / (v_off+hp) (block width = 2*64).
    For self-attention all three are the SAME fused [B, S, 3*H*d] array (no
    wrapper slice copies).  mask: [B, S_q, S_kv] int8 (nonzero == masked).
    Returns ctx [B, S_q, H*d_v] bf16 and attn [B, H, S_q, S_kv] (bf16)."""
    B, S_q, _ = q_src.shape
    S_kv = k_src.shape[1]
    hb = _HEADS_PER_BLOCK
    assert n_heads % hb == 0
    tq = _pick_tile(S_q, (512, 256, 128, 64, 32, 16, 8))

    return pl.pallas_call(
        _attn_kernel,
        out_shape=(
            jax.ShapeDtypeStruct((B, S_q, n_heads * d_v), jnp.bfloat16),
            jax.ShapeDtypeStruct((B, n_heads, S_q, S_kv), attn_dtype),
        ),
        grid=(B, n_heads // hb, S_q // tq),
        in_specs=[
            pl.BlockSpec((None, tq, hb * d_k),
                         lambda b, hp, qi: (b, qi, q_off + hp)),
            # K/V ignore the q-tile axis -> their DMAs are reused across q-tiles
            pl.BlockSpec((None, S_kv, hb * d_k),
                         lambda b, hp, qi: (b, 0, k_off + hp)),
            pl.BlockSpec((None, S_kv, hb * d_v),
                         lambda b, hp, qi: (b, 0, v_off + hp)),
            # mask follows the q rows but not the head axis (no x8 broadcast)
            pl.BlockSpec((None, tq, S_kv), lambda b, hp, qi: (b, qi, 0)),
        ],
        out_specs=(
            pl.BlockSpec((None, tq, hb * d_v), lambda b, hp, qi: (b, qi, hp)),
            pl.BlockSpec((None, hb, tq, S_kv), lambda b, hp, qi: (b, hp, qi, 0)),
        ),
        compiler_params=pltpu.CompilerParams(
            dimension_semantics=("parallel", "parallel", "arbitrary"),
            vmem_limit_bytes=32 * 1024 * 1024,   # explicit, conservative (v7x-safe)
        ),
    )(q_src, k_src, v_src, mask_i8)


# ---------------------------------------------------------------------------
# Kernel 3: fused fc projection + residual add + LayerNorm(d_model)
# ---------------------------------------------------------------------------
def _out_proj_ln_kernel(x_ref, w_ref, r_ref, o_ref):
    y = jnp.dot(x_ref[...], w_ref[...], preferred_element_type=jnp.float32)
    y = y + r_ref[...]
    mean = jnp.mean(y, axis=-1, keepdims=True)
    c = y - mean
    var = jnp.mean(c * c, axis=-1, keepdims=True)
    # nn.LayerNorm(d_model) is constructed inside forward() -> gamma=1, beta=0.
    o_ref[...] = (c * jax.lax.rsqrt(var + _LN_EPS)).astype(o_ref.dtype)


def pallas_out_proj_layernorm(ctx2d, w_fc_t, residual2d):
    M, Kc = ctx2d.shape
    Kc2, N = w_fc_t.shape
    assert Kc == Kc2
    tm = _pick_tile(M, (256, 128, 64, 32, 16, 8))
    return pl.pallas_call(
        _out_proj_ln_kernel,
        out_shape=jax.ShapeDtypeStruct((M, N), jnp.float32),
        grid=(M // tm,),
        in_specs=[
            pl.BlockSpec((tm, Kc), lambda i: (i, 0)),
            pl.BlockSpec((Kc, N), lambda i: (0, 0)),   # bf16 fc weight stays resident
            pl.BlockSpec((tm, N), lambda i: (i, 0)),
        ],
        out_specs=pl.BlockSpec((tm, N), lambda i: (i, 0)),
        compiler_params=pltpu.CompilerParams(
            dimension_semantics=("parallel",),
        ),
    )(ctx2d, w_fc_t, residual2d)


# ---------------------------------------------------------------------------
# Full MultiHeadAttention forward
# ---------------------------------------------------------------------------
def multi_head_attention(params, input_Q, input_K, input_V, attn_mask):
    """
    input_Q/K/V : [batch, seq, d_model] float32
    attn_mask   : [batch, seq, seq]     bool (True == masked)
    returns     : (output [batch, seq, d_model] f32,
                   attn   [batch, n_heads, seq, seq] bf16)
    """
    B, S_q, _ = input_Q.shape
    residual = input_Q
    w_qkv_t = params["W_QKV_T"]               # [d_model, 3*H*d_k] bf16, scale folded
    nq = n_heads * d_k
    hpb = n_heads // _HEADS_PER_BLOCK

    mask_i8 = attn_mask.astype(jnp.int8)      # compact mask, no head broadcast

    if (input_K is input_Q) and (input_V is input_Q):
        # self-attention: one fused QKV matmul; the q/k/v split is done by the
        # attention BlockSpec column-block offsets (no slice copies in HBM).
        qkv = pallas_matmul(input_Q.reshape(B * S_q, d_model), w_qkv_t)
        qkv = qkv.reshape(B, S_q, 3 * nq)
        ctx, attn = pallas_attention(qkv, qkv, qkv, mask_i8,
                                     q_off=0, k_off=hpb, v_off=2 * hpb)
    else:
        # TODO(synk): cross-attention fallback runs three projections; dispatch
        #   relies on Python object identity for the self-attention fast path.
        S_kv = input_K.shape[1]
        q = pallas_matmul(input_Q.reshape(B * S_q, d_model),
                          w_qkv_t[:, :nq]).reshape(B, S_q, nq)
        k = pallas_matmul(input_K.reshape(B * S_kv, d_model),
                          w_qkv_t[:, nq:2 * nq]).reshape(B, S_kv, nq)
        v = pallas_matmul(input_V.reshape(B * S_kv, d_model),
                          w_qkv_t[:, 2 * nq:]).reshape(B, S_kv, nq)
        ctx, attn = pallas_attention(q, k, v, mask_i8,
                                     q_off=0, k_off=0, v_off=0)

    # --- fc projection + residual + LayerNorm, fused --------------------------
    out2d = pallas_out_proj_layernorm(
        ctx.reshape(B * S_q, n_heads * d_v),
        params["fc_T"],
        residual.reshape(B * S_q, d_model),
    )
    return out2d.reshape(B, S_q, d_model), attn


def init_params(key):
    """Returns (pallas_params, f32_reference_weights).

    PyTorch nn.Linear(..., bias=False) weights are [out, in]; for the Pallas
    kernels we pre-transpose once to [in, out], fold 1/sqrt(d_k) into W_Q and
    store in bf16 (weights stream from HBM every step -> halve the bytes)."""
    k1, k2, k3, k4 = jax.random.split(key, 4)
    scale = 0.02
    w_q = scale * jax.random.normal(k1, (n_heads * d_k, d_model), jnp.float32)
    w_k = scale * jax.random.normal(k2, (n_heads * d_k, d_model), jnp.float32)
    w_v = scale * jax.random.normal(k3, (n_heads * d_v, d_model), jnp.float32)
    w_fc = scale * jax.random.normal(k4, (d_model, n_heads * d_v), jnp.float32)

    w_q_scaled = w_q / math.sqrt(d_k)          # fold softmax scale into W_Q
    w_qkv_t = jnp.concatenate(
        [w_q_scaled.T, w_k.T, w_v.T], axis=1).astype(jnp.bfloat16)
    params = {"W_QKV_T": w_qkv_t, "fc_T": w_fc.T.astype(jnp.bfloat16)}
    return params, (w_q, w_k, w_v, w_fc)


# ---------------------------------------------------------------------------
# Pure-JAX f32 reference (mirrors the PyTorch module) for a tolerance check
# ---------------------------------------------------------------------------
def reference_mha(weights, xq, xk, xv, mask):
    w_q, w_k, w_v, w_fc = weights
    B, S, _ = xq.shape
    q = (xq @ w_q.T).reshape(B, S, n_heads, d_k).transpose(0, 2, 1, 3)
    k = (xk @ w_k.T).reshape(B, -1, n_heads, d_k).transpose(0, 2, 1, 3)
    v = (xv @ w_v.T).reshape(B, -1, n_heads, d_v).transpose(0, 2, 1, 3)
    scores = jnp.einsum("bhqd,bhkd->bhqk", q, k) / math.sqrt(d_k)
    scores = jnp.where(mask[:, None, :, :], jnp.float32(_NEG_INF), scores)
    attn = jax.nn.softmax(scores, axis=-1)
    ctx = jnp.einsum("bhqk,bhkd->bhqd", attn, v)
    ctx = ctx.transpose(0, 2, 1, 3).reshape(B, S, n_heads * d_v)
    out = ctx @ w_fc.T + xq
    mean = out.mean(-1, keepdims=True)
    var = ((out - mean) ** 2).mean(-1, keepdims=True)
    return (out - mean) / jnp.sqrt(var + _LN_EPS), attn


if __name__ == "__main__":
    key = jax.random.PRNGKey(0)
    kp, kx = jax.random.split(key, 2)

    batch, seq = 2, 8
    params, ref_weights = init_params(kp)

    # self-attention: the same tensor is passed as Q, K and V (standard
    # encoder use of this module).
    x = jax.random.normal(kx, (batch, seq, d_model), jnp.float32)

    # key-padding style mask: mask the last 2 key positions (True == masked)
    key_pad = jnp.zeros((batch, seq), dtype=bool).at[:, -2:].set(True)
    attn_mask = jnp.broadcast_to(key_pad[:, None, :], (batch, seq, seq))

    output, attn = multi_head_attention(params, x, x, x, attn_mask)
    jax.block_until_ready((output, attn))

    assert output.shape == (batch, seq, d_model)
    assert attn.shape == (batch, n_heads, seq, seq)
    assert bool(jnp.all(jnp.isfinite(output))) and bool(jnp.all(jnp.isfinite(attn)))

    # Loose-tolerance check against the f32 reference (bf16 MXU inputs, bf16
    # attn output and approx reciprocal give ~1e-2-level deviations).
    ref_out, ref_attn = reference_mha(ref_weights, x, x, x, attn_mask)
    assert bool(jnp.allclose(output, ref_out, atol=5e-2, rtol=5e-2)), (
        float(jnp.max(jnp.abs(output - ref_out))))
    assert bool(jnp.allclose(attn.astype(jnp.float32), ref_attn, atol=2e-2)), (
        float(jnp.max(jnp.abs(attn.astype(jnp.float32) - ref_attn))))

    print("KERNEL_OK")
</pallas_src>

<mosaic_0001>
module attributes {stable_mosaic.version = 11 : i64} {
  func.func @_matmul_kernel(%arg0: i32, %arg1: i32, %arg2: i32, %arg3: memref<16x512xf32, #tpu.memory_space<vmem>>, %arg4: memref<512x512xbf16, #tpu.memory_space<vmem>>, %arg5: memref<16x512xbf16, #tpu.memory_space<vmem>>, %arg6: memref<16x512xf32, #tpu.memory_space<vmem>>) attributes {dimension_semantics = [#tpu.dimension_semantics<parallel>, #tpu.dimension_semantics<parallel>, #tpu.dimension_semantics<arbitrary>], iteration_bounds = array<i64: 1, 3, 1>, scalar_prefetch = 0 : i64, scratch_operands = 1 : i64, tpu.core_type = #tpu.core_type<tc>, window_params = [{transform_indices = @transform_0, window_bounds = array<i64: 16, 512>}, {transform_indices = @transform_1, window_bounds = array<i64: 512, 512>}, {transform_indices = @transform_2, window_bounds = array<i64: 16, 512>}]} {
    %c0_i32 = arith.constant 0 : i32
    %0 = arith.cmpi eq, %arg2, %c0_i32 : i32
    %1 = arith.extui %0 : i1 to i32
    %c0_i32_0 = arith.constant 0 : i32
    %2 = arith.cmpi ne, %1, %c0_i32_0 : i32
    scf.if %2 {
      %cst_10 = arith.constant 0.000000e+00 : f32
      %13 = vector.broadcast %cst_10 : f32 to vector<16x512xf32>
      %c0_11 = arith.constant 0 : index
      %c0_12 = arith.constant 0 : index
      %14 = vector.load %arg6[%c0_11, %c0_12] : memref<16x512xf32, #tpu.memory_space<vmem>>, vector<16x512xf32>
      tpu.vector_store %arg6[%c0_11, %c0_12], %13 {strides = array<i32>} : memref<16x512xf32, #tpu.memory_space<vmem>>, vector<16x512xf32>,
    } else {
    }
    %c0 = arith.constant 0 : index
    %c0_1 = arith.constant 0 : index
    %3 = vector.load %arg6[%c0, %c0_1] : memref<16x512xf32, #tpu.memory_space<vmem>>, vector<16x512xf32>
    %c0_2 = arith.constant 0 : index
    %c0_3 = arith.constant 0 : index
    %4 = vector.load %arg3[%c0_2, %c0_3] : memref<16x512xf32, #tpu.memory_space<vmem>>, vector<16x512xf32>
    %5 = arith.truncf %4 : vector<16x512xf32> to vector<16x512xbf16>
    %c0_4 = arith.constant 0 : index
    %c0_5 = arith.constant 0 : index
    %6 = vector.load %arg4[%c0_4, %c0_5] : memref<512x512xbf16, #tpu.memory_space<vmem>>, vector<512x512xbf16>
    %cst = arith.constant dense<0.000000e+00> : vector<16x512xf32>
    %7 = tpu.matmul %5, %6, %cst {dimension_numbers = #tpu.dot_dimension_numbers<[1], [0], [0], [1], [0, 0, 1, 1], [], []>} : vector<16x512xbf16>, vector<512x512xbf16>, vector<16x512xf32> -> vector<16x512xf32>
    %8 = arith.addf %3, %7 : vector<16x512xf32>
    %c0_6 = arith.constant 0 : index
    %c0_7 = arith.constant 0 : index
    %9 = vector.load %arg6[%c0_6, %c0_7] : memref<16x512xf32, #tpu.memory_space<vmem>>, vector<16x512xf32>
    tpu.vector_store %arg6[%c0_6, %c0_7], %8 {strides = array<i32>} : memref<16x512xf32, #tpu.memory_space<vmem>>, vector<16x512xf32>,
    %c0_i32_8 = arith.constant 0 : i32
    %10 = arith.cmpi eq, %arg2, %c0_i32_8 : i32
    %11 = arith.extui %10 : i1 to i32
    %c0_i32_9 = arith.constant 0 : i32
    %12 = arith.cmpi ne, %11, %c0_i32_9 : i32
    scf.if %12 {
      %c0_10 = arith.constant 0 : index
      %c0_11 = arith.constant 0 : index
      %13 = vector.load %arg6[%c0_10, %c0_11] : memref<16x512xf32, #tpu.memory_space<vmem>>, vector<16x512xf32>
      %14 = arith.truncf %13 : vector<16x512xf32> to vector<16x512xbf16>
      %c0_12 = arith.constant 0 : index
      %c0_13 = arith.constant 0 : index
      %15 = vector.load %arg5[%c0_12, %c0_13] : memref<16x512xbf16, #tpu.memory_space<vmem>>, vector<16x512xbf16>
      tpu.vector_store %arg5[%c0_12, %c0_13], %14 {strides = array<i32>} : memref<16x512xbf16, #tpu.memory_space<vmem>>, vector<16x512xbf16>,
    } else {
    }
    return
  }
  func.func @transform_0(%arg0: i32, %arg1: i32, %arg2: i32) -> (i32, i32) {
    %c0_i32 = arith.constant 0 : i32
    return %arg0, %arg2 : i32, i32
  }
  func.func @transform_1(%arg0: i32, %arg1: i32, %arg2: i32) -> (i32, i32) {
    %c0_i32 = arith.constant 0 : i32
    return %arg2, %arg1 : i32, i32
  }
  func.func @transform_2(%arg0: i32, %arg1: i32, %arg2: i32) -> (i32, i32) {
    %c0_i32 = arith.constant 0 : i32
    return %arg0, %arg1 : i32, i32
  }
}

</mosaic_0001>

<bundles_post_ra>
// kernel: tpu_custom_call.1
= control target key start
LH: loop header
LB: loop body
LE: loop exit
PB: predicated region body
PF: predicated region fallthrough
CT: control target
= control target key end

     0   :  { %7 = vsyncpa [#allocation4], 0  ;;  %s2760_s0 = inlined_call_operand.hbm [shape: f32[16,512], index: 0, kind: input, shape index: {}]   ;;  %s2761_s1 = inlined_call_operand.hbm [shape: bf16[512,1536], index: 1, kind: input, shape index: {}]   ;;  %s2762_s2 = inlined_call_operand.hbm [shape: bf16[16,1536], index: 2, kind: output, shape index: {}]  }
   0x1   :  { %8 = vsyncpa [#allocation7], 0 }
   0x2   :  { %10 = vsyncpa [#allocation7 + $0x1], 0 }
   0x3   :  { %11 = vsyncpa [#allocation5], 0 }
   0x4   :  { %13 = vsyncpa [#allocation5 + $0x1], 0  ;;  %s2323_s9 = smov 0   ;;  %s2325_s10 = smov 0  }
   0x5   :  { %s2327_s11 = smov 0   ;;  %s2329_s12 = smov 0  }
   0x6   :  { %s2331_s13 = smov 0   ;;  %s2333_s14 = smov 0  }
   0x7 LB: > { %s1411_s15 = sadd.s32 4294967295, %s2297_s14   ;;  %s1412_s16 = sadd.s32 4294967294, %s2297_s14   ;;  %s2297_s14 = sphi %s2333_s14, %s19_s14   ;;  %s2293_s13 = sphi %s2331_s13, %s2774_s13   ;;  %s2289_s12 = sphi %s2329_s12, %s2773_s12   ;;  %s2285_s11 = sphi %s2327_s11, %s2772_s11   ;;  %s2281_s10 = sphi %s2325_s10, %s2771_s10   ;;  %s2277_s9 = sphi %s2323_s9, %s2770_s9  }
   0x8   : > { %p88_p0 = scmp.ne.s32.totalorder %s2281_s10, %s2277_s9  ;;  %p2357_p1 = scmp.eq.s32.totalorder %s1411_s15, 0 }
   0x9   : > { %p2361_p2 = scmp.eq.s32.totalorder %s1411_s15, 2  ;;  %p120_p3 = scmp.eq.s32.totalorder %s1412_s16, 2 }
   0xa   : > { %p2367_p4 = por %p2357_p1, %p88_p0  ;;  %p1413_p5 = scmp.ge.s32.totalorder %s2297_s14, 1 }
   0xb   : > { %p2372_p6 = por %p120_p3, %p88_p0  ;;  %p127_p7 = scmp.lt.s32.totalorder %s2297_s14, 4 }
   0xc   : > { %s144_s23 = sshll.u32 %s2760_s0, 4  ;;  %s2299_s25 = smov [#allocation3]   ;;  %s145_s23 = int_to_ptr.hbm [resolvable:$true] %s144_s23 }
   0xd   : > { %p2380_p8 = pnand %p1413_p5, %p127_p7  ;;  %s146_s26 = sshll.u32 %s2299_s25, 4  ;;  %s147_s26 = int_to_ptr.vmem [resolvable:$true] %s146_s26 }
   0xe   : > { %s2300_s27 = smov 512   ;;  %s2301_s28 = smov 32  }
   0xf   : > { %p2078_p9 = pneg %p2380_p8  ;;  %s34_s29 = sadd.s32 1, %s2293_s13 }
  0x10   : > { %p36_p11 = scmp.ge.s32.totalorder %s34_s29, 3  ;;  %s75_s30 = sadd.s32 1, %s2285_s11 }
  0x11   : > { %p2079_p10 = pnand %p2078_p9, %p2357_p1  ;;  %p82_p12 = scmp.ne.s32.totalorder %s2285_s11, %s2281_s10 }
  0x12   : > { %p83_p13 = scmp.eq.s32.totalorder %s2297_s14, 0  ;;  %s2776_s29 = smov (%p36_p11, %s34_s29), 0 }
  0x13   : > { %2081 = dma.hbm_to_vmem [thread:$0]  (!%p2079_p10), %s145_s23, 1024, %s147_s26, [#allocation4], %s2300_s27, %s2300_s27, %s2301_s28  }
  0x14   : > { %p2395_p0 = por %p83_p13, %p82_p12  ;;  %p2401_p3 = por %p2361_p2, %p82_p12 }
  0x15   : > { %s71_s5 = ssub.s32 %s2293_s13, %s2776_s29  ;;  %p2091_p5 = scmp.lt.s32.totalorder %s2297_s14, 3 }
  0x16   : > { %p73_p7 = scmp.eq.s32.totalorder %s71_s5, 0  ;;  %s160_s6 = sand.u32 1, %s2285_s11  }
  0x17   : > { %s1416_s7 = sshll.u32 %s160_s6, 10  ;;  %s1940_s15 = sshll.u32 %s2293_s13, 4 }
  0x18   : > { %s2410_s8 = scalar_select %p73_p7, %s2285_s11, %s75_s30  }
  0x19   : > { %s172_s22 = scalar_lea.hbm %s2761_s1, %s1940_s15  ;;  %s164_s23 = scalar_lea.vmem [#allocation6], %s1416_s7 }
  0x1a   : > { %s175_s25 = sshll.u32 %s164_s23, 4  ;;  %s173_s18 = sshll.u32 %s172_s22, 4  ;;  %s176_s25 = int_to_ptr.vmem [resolvable:$true] %s175_s25  ;;  %s174_s18 = int_to_ptr.hbm [resolvable:$true] %s173_s18 }
  0x1b   : > { %p2083_p2 = pnand %p2091_p5, %p2395_p0  ;;  %s161_s26 = scalar_lea.sflag [#allocation7], %s160_s6 }
  0x1c   : > { %s2302_s27 = smov 768   ;;  %s2303_s28 = smov 256  }
  0x1d   : > { %s2304_s5 = smov 16   ;;  %187 = sbr.rel (%p2380_p8) target bundleno = 322 (0x142), region = 28 }
  0x1e   : > { %2085 = dma.hbm_to_vmem [thread:$0]  (!%p2083_p2), %s174_s18, 16384, %s176_s25, %s161_s26, %s2302_s27, %s2303_s28, %s2304_s5  }
  0x22   : > { %2264 = dma.done.wait (%p2357_p1), [#allocation4], 1024  }
  0x23   : > { %2266 = vsyncadd (%p2357_p1), [#allocation4], 4294966272  ;;  %s2425_s30 = sand.u32 1, %s2281_s10  }
  0x24   : > { %s1421_s3 = sshll.u32 %s2425_s30, 10  ;;  %s195_s6 = scalar_lea.sflag [#allocation7], %s2425_s30 }
  0x25   : > { %s2429_s7 = scalar_lea.vmem [#allocation6], %s1421_s3 }
  0x26   : > { %2268 = dma.done.wait (%p2367_p4), %s195_s6, 16384  }
  0x27   : > { %2270 = vsyncadd (%p2367_p4), %s195_s6, 4294950912  ;;  %v1537_v0 = vld [vmem:[%s2429_s7 + $0xe0] sm:$0xf]  ;;  %v1971_v1 = vld [vmem:[%s2429_s7 + $0xec] sm:$0xf0]  ;;  %s1422_s17 = sshll.u32 %s2425_s30, 5 }
  0x28   : > { %v1665_v2 = vld [vmem:[%s2429_s7 + $0x1e0] sm:$0xf]  ;;  %v1538_v3 = vor.u32 %v1971_v1, %v1537_v0  ;;  %v2003_v4 = vld [vmem:[%s2429_s7 + $0x1ec] sm:$0xf0]  ;;  %s2716_s19 = scalar_lea.vmem [#allocation8], %s1422_s17  ;;  %s2069_s24 = sshll.u32 %s2289_s12, 4 }
  0x29   : > { %v1793_v5 = vld [vmem:[%s2429_s7 + $0x2e0] sm:$0xf]  ;;  %v2035_v6 = vld [vmem:[%s2429_s7 + $0x2ec] sm:$0xf0]  ;;  %v1666_v7 = vor.u32 %v2003_v4, %v1665_v2  ;;  %s1300_s21 = scalar_lea.hbm %s2762_s2, %s2069_s24  ;;  %s1301_s22 = sshll.u32 %s2716_s19, 4  ;;  %s1302_s22 = int_to_ptr.vmem [resolvable:$true] %s1301_s22 }
  0x2a   : > { %v1794_v8 = vor.u32 %v2035_v6, %v1793_v5  ;;  %v1921_v9 = vld [vmem:[%s2429_s7 + $0x3e0] sm:$0xf]  ;;  %v2067_v10 = vld [vmem:[%s2429_s7 + $0x3ec] sm:$0xf0]  ;;  %1026 = vmatpush.bf16.msra.mxu0 %v1538_v3  ;;  %s1303_s23 = sshll.u32 %s1300_s21, 4  ;;  %s1286_s12 = scalar_lea.sflag [#allocation5], %s2425_s30  ;;  %s1304_s23 = int_to_ptr.hbm [resolvable:$true] %s1303_s23 }
  0x2b   : > { %v1521_v11 = vld [vmem:[%s2429_s7 + $0xc0] sm:$0xf]  ;;  %v1922_v12 = vor.u32 %v2067_v10, %v1921_v9  ;;  %v1967_v13 = vld [vmem:[%s2429_s7 + $0xcc] sm:$0xf0]  ;;  %1040 = vmatpush.bf16.msra.mxu1 %v1666_v7  ;;  %s2225_s25 = sshra.s32 %s1304_s23, 4  ;;  %s2231_s28 = scalar_lea.hbm %s2762_s2, 96  ;;  %s2226_s25 = int_to_ptr.hbm [resolvable:$true] %s2225_s25 }
  0x2c   : > { %v1649_v14 = vld [vmem:[%s2429_s7 + $0x1c0] sm:$0xf]  ;;  %v1999_v15 = vld [vmem:[%s2429_s7 + $0x1cc] sm:$0xf0]  ;;  %1054 = vmatpush.bf16.msra.mxu2 %v1794_v8  ;;  %v1522_v16 = vor.u32 %v1967_v13, %v1521_v11  ;;  %s2227_s18 = scalar_lea.hbm %s2226_s25, 32  ;;  %p2232_p9 = scmp.lt.s32.totalorder %s2226_s25, %s2762_s2 }
  0x2d   : > { %v1650_v17 = vor.u32 %v1999_v15, %v1649_v14  ;;  %v1777_v18 = vld [vmem:[%s2429_s7 + $0x2c0] sm:$0xf]  ;;  %v2031_v19 = vld [vmem:[%s2429_s7 + $0x2cc] sm:$0xf0]  ;;  %1068 = vmatpush.bf16.msra.mxu3 %v1922_v12  ;;  %p2228_p1 = scmp.ne.s32.totalorder %s2226_s25, %s2227_s18  ;;  %p2233_p10 = scmp.lt.s32.totalorder %s2231_s28, %s2227_s18 }
  0x2e   : > { %v1905_v20 = vld [vmem:[%s2429_s7 + $0x3c0] sm:$0xf]  ;;  %v1778_v21 = vor.u32 %v2031_v19, %v1777_v18  ;;  %v2063_v22 = vld [vmem:[%s2429_s7 + $0x3cc] sm:$0xf0]  ;;  %1027 = vmatpush.bf16.msra.mxu0 %v1522_v16 }
  0x2f   : > { %v1505_v23 = vld [vmem:[%s2429_s7 + $0xa0] sm:$0xf]  ;;  %v1963_v24 = vld [vmem:[%s2429_s7 + $0xac] sm:$0xf0]  ;;  %v1906_v25 = vor.u32 %v2063_v22, %v1905_v20  ;;  %1041 = vmatpush.bf16.msra.mxu1 %v1650_v17  ;;  %p2229_p4 = pnand %p2228_p1, %p2401_p3  ;;  %p2234_p11 = por %p2233_p10, %p2232_p9 }
  0x30   : > { %v1633_v26 = vld [vmem:[%s2429_s7 + $0x1a0] sm:$0xf]  ;;  %v1995_v27 = vld [vmem:[%s2429_s7 + $0x1ac] sm:$0xf0]  ;;  %v1506_v29 = vor.u32 %v1963_v24, %v1505_v23  ;;  %1055 = vmatpush.bf16.msra.mxu2 %v1778_v21 }
  0x31   : > { %v1761_v28 = vld [vmem:[%s2429_s7 + $0x2a0] sm:$0xf]  ;;  %v2027_v30 = vld [vmem:[%s2429_s7 + $0x2ac] sm:$0xf0]  ;;  %v1634_v33 = vor.u32 %v1995_v27, %v1633_v26  ;;  %1069 = vmatpush.bf16.msra.mxu3 %v1906_v25  ;;  %p2230_p8 = pneg %p2229_p4 }
  0x32   : > { %v1889_v31 = vld [vmem:[%s2429_s7 + $0x3a0] sm:$0xf]  ;;  %v2059_v32 = vld [vmem:[%s2429_s7 + $0x3ac] sm:$0xf0]  ;;  %v1762_v34 = vor.u32 %v2027_v30, %v1761_v28  ;;  %1028 = vmatpush.bf16.msra.mxu0 %v1506_v29  ;;  %v1969_v28 = vld [vmem:[%s2429_s7 + $0xe4] sm:$0xf] }
  0x33   : > { %v1489_v35 = vld [vmem:[%s2429_s7 + $0x80] sm:$0xf]  ;;  %v1959_v36 = vld [vmem:[%s2429_s7 + $0x8c] sm:$0xf0]  ;;  %v1890_v38 = vor.u32 %v2059_v32, %v1889_v31  ;;  %1042 = vmatpush.bf16.msra.mxu1 %v1634_v33  ;;  %v1539_v29 = vld [vmem:[%s2429_s7 + $0xf0] sm:$0xf0]  ;;  %p2235_p12 = pnand %p2234_p11, %p2230_p8 }
  0x34   : > { %v1617_v37 = vld [vmem:[%s2429_s7 + $0x180] sm:$0xf]  ;;  %v1991_v39 = vld [vmem:[%s2429_s7 + $0x18c] sm:$0xf0]  ;;  %v1490_v44 = vor.u32 %v1959_v36, %v1489_v35  ;;  %1056 = vmatpush.bf16.msra.mxu2 %v1762_v34  ;;  %v2001_v30 = vld [vmem:[%s2429_s7 + $0x1e4] sm:$0xf] }
  0x35   : > { %v1745_v40 = vld [vmem:[%s2429_s7 + $0x280] sm:$0xf]  ;;  %v2023_v41 = vld [vmem:[%s2429_s7 + $0x28c] sm:$0xf0]  ;;  %v1618_v45 = vor.u32 %v1991_v39, %v1617_v37  ;;  %1070 = vmatpush.bf16.msra.mxu3 %v1890_v38  ;;  %v1667_v32 = vld [vmem:[%s2429_s7 + $0x1f0] sm:$0xf0] }
  0x36   : > { %v1873_v42 = vld [vmem:[%s2429_s7 + $0x380] sm:$0xf]  ;;  %v2055_v43 = vld [vmem:[%s2429_s7 + $0x38c] sm:$0xf0]  ;;  %v1746_v46 = vor.u32 %v2023_v41, %v1745_v40  ;;  %1029 = vmatpush.bf16.msra.mxu0 %v1490_v44  ;;  %v2033_v33 = vld [vmem:[%s2429_s7 + $0x2e4] sm:$0xf]  ;;  %v1542_v40 = vor.u32 %v1969_v28, %v1539_v29 }
  0x37   : > { %v1473_v47 = vld [vmem:[%s2429_s7 + $0x60] sm:$0xf]  ;;  %v1955_v48 = vld [vmem:[%s2429_s7 + $0x6c] sm:$0xf0]  ;;  %v1874_v50 = vor.u32 %v2055_v43, %v1873_v42  ;;  %1043 = vmatpush.bf16.msra.mxu1 %v1618_v45  ;;  %v1795_v34 = vld [vmem:[%s2429_s7 + $0x2f0] sm:$0xf0]  ;;  %v1670_v43 = vor.u32 %v2001_v30, %v1667_v32 }
  0x38   : > { %v1601_v49 = vld [vmem:[%s2429_s7 + $0x160] sm:$0xf]  ;;  %v1987_v51 = vld [vmem:[%s2429_s7 + $0x16c] sm:$0xf0]  ;;  %v1474_v56 = vor.u32 %v1955_v48, %v1473_v47  ;;  %1057 = vmatpush.bf16.msra.mxu2 %v1746_v46  ;;  %v2065_v37 = vld [vmem:[%s2429_s7 + $0x3e4] sm:$0xf]  ;;  %v1798_v44 = vor.u32 %v2033_v33, %v1795_v34 }
  0x39   : > { %v1729_v52 = vld [vmem:[%s2429_s7 + $0x260] sm:$0xf]  ;;  %v2019_v53 = vld [vmem:[%s2429_s7 + $0x26c] sm:$0xf0]  ;;  %v1602_v57 = vor.u32 %v1987_v51, %v1601_v49  ;;  %1071 = vmatpush.bf16.msra.mxu3 %v1874_v50  ;;  %v1923_v38 = vld [vmem:[%s2429_s7 + $0x3f0] sm:$0xf0] }
  0x3a   : > { %v1857_v54 = vld [vmem:[%s2429_s7 + $0x360] sm:$0xf]  ;;  %v2051_v55 = vld [vmem:[%s2429_s7 + $0x36c] sm:$0xf0]  ;;  %v1730_v58 = vor.u32 %v2019_v53, %v1729_v52  ;;  %1030 = vmatpush.bf16.msra.mxu0 %v1474_v56  ;;  %v1965_v41 = vld [vmem:[%s2429_s7 + $0xc4] sm:$0xf]  ;;  %v1926_v48 = vor.u32 %v2065_v37, %v1923_v38 }
  0x3b   : > { %v1457_v59 = vld [vmem:[%s2429_s7 + $0x40] sm:$0xf]  ;;  %v1951_v60 = vld [vmem:[%s2429_s7 + $0x4c] sm:$0xf0]  ;;  %v1858_v62 = vor.u32 %v2051_v55, %v1857_v54  ;;  %1044 = vmatpush.bf16.msra.mxu1 %v1602_v57  ;;  %v1523_v42 = vld [vmem:[%s2429_s7 + $0xd0] sm:$0xf0] }
  0x3c   : > { %v1585_v61 = vld [vmem:[%s2429_s7 + $0x140] sm:$0xf]  ;;  %v1983_v63 = vld [vmem:[%s2429_s7 + $0x14c] sm:$0xf0]  ;;  %v1458_v4 = vor.u32 %v1951_v60, %v1457_v59  ;;  %1058 = vmatpush.bf16.msra.mxu2 %v1730_v58  ;;  %v1997_v45 = vld [vmem:[%s2429_s7 + $0x1c4] sm:$0xf]  ;;  %v1526_v55 = vor.u32 %v1965_v41, %v1523_v42 }
  0x3d   : > { %v1713_v0 = vld [vmem:[%s2429_s7 + $0x240] sm:$0xf]  ;;  %v2015_v1 = vld [vmem:[%s2429_s7 + $0x24c] sm:$0xf0]  ;;  %v1586_v5 = vor.u32 %v1983_v63, %v1585_v61  ;;  %1072 = vmatpush.bf16.msra.mxu3 %v1858_v62  ;;  %v1651_v46 = vld [vmem:[%s2429_s7 + $0x1d0] sm:$0xf0] }
  0x3e   : > { %v1841_v2 = vld [vmem:[%s2429_s7 + $0x340] sm:$0xf]  ;;  %v2047_v3 = vld [vmem:[%s2429_s7 + $0x34c] sm:$0xf0]  ;;  %v1714_v6 = vor.u32 %v2015_v1, %v1713_v0  ;;  %1031 = vmatpush.bf16.msra.mxu0 %v1458_v4  ;;  %v2029_v47 = vld [vmem:[%s2429_s7 + $0x2c4] sm:$0xf]  ;;  %v1654_v60 = vor.u32 %v1997_v45, %v1651_v46 }
  0x3f   : > { %v1441_v7 = vld [vmem:[%s2429_s7 + $0x20] sm:$0xf]  ;;  %v1947_v8 = vld [vmem:[%s2429_s7 + $0x2c] sm:$0xf0]  ;;  %v1842_v10 = vor.u32 %v2047_v3, %v1841_v2  ;;  %1045 = vmatpush.bf16.msra.mxu1 %v1586_v5  ;;  %v1779_v49 = vld [vmem:[%s2429_s7 + $0x2d0] sm:$0xf0] }
  0x40   : > { %v1569_v9 = vld [vmem:[%s2429_s7 + $0x120] sm:$0xf]  ;;  %v1979_v11 = vld [vmem:[%s2429_s7 + $0x12c] sm:$0xf0]  ;;  %v1442_v16 = vor.u32 %v1947_v8, %v1441_v7  ;;  %1059 = vmatpush.bf16.msra.mxu2 %v1714_v6  ;;  %v2061_v50 = vld [vmem:[%s2429_s7 + $0x3c4] sm:$0xf]  ;;  %v1782_v61 = vor.u32 %v2029_v47, %v1779_v49 }
  0x41   : > { %v1697_v12 = vld [vmem:[%s2429_s7 + $0x220] sm:$0xf]  ;;  %v2011_v13 = vld [vmem:[%s2429_s7 + $0x22c] sm:$0xf0]  ;;  %v1570_v19 = vor.u32 %v1979_v11, %v1569_v9  ;;  %1073 = vmatpush.bf16.msra.mxu3 %v1842_v10  ;;  %v1907_v51 = vld [vmem:[%s2429_s7 + $0x3d0] sm:$0xf0] }
  0x42   : > { %v1825_v14 = vld [vmem:[%s2429_s7 + $0x320] sm:$0xf]  ;;  %v2043_v15 = vld [vmem:[%s2429_s7 + $0x32c] sm:$0xf0]  ;;  %v1698_v20 = vor.u32 %v2011_v13, %v1697_v12  ;;  %1032 = vmatpush.bf16.msra.mxu0 %v1442_v16  ;;  %v1961_v52 = vld [vmem:[%s2429_s7 + $0xa4] sm:$0xf]  ;;  %v1910_v1 = vor.u32 %v2061_v50, %v1907_v51 }
  0x43   : > { %v1425_v17 = vld [vmem:[%s2429_s7] sm:$0xf]  ;;  %v1943_v18 = vld [vmem:[%s2429_s7 + $0xc] sm:$0xf0]  ;;  %v1826_v24 = vor.u32 %v2043_v15, %v1825_v14  ;;  %1046 = vmatpush.bf16.msra.mxu1 %v1570_v19  ;;  %v1507_v56 = vld [vmem:[%s2429_s7 + $0xb0] sm:$0xf0] }
  0x44   : > { %v1553_v21 = vld [vmem:[%s2429_s7 + $0x100] sm:$0xf]  ;;  %v1975_v22 = vld [vmem:[%s2429_s7 + $0x10c] sm:$0xf0]  ;;  %v1426_v31 = vor.u32 %v1943_v18, %v1425_v17  ;;  %1060 = vmatpush.bf16.msra.mxu2 %v1698_v20  ;;  %v1993_v57 = vld [vmem:[%s2429_s7 + $0x1a4] sm:$0xf]  ;;  %v1510_v9 = vor.u32 %v1961_v52, %v1507_v56 }
  0x45   : > { %v1681_v23 = vld [vmem:[%s2429_s7 + $0x200] sm:$0xf]  ;;  %v2007_v25 = vld [vmem:[%s2429_s7 + $0x20c] sm:$0xf0]  ;;  %v1554_v35 = vor.u32 %v1975_v22, %v1553_v21  ;;  %1074 = vmatpush.bf16.msra.mxu3 %v1826_v24  ;;  %v1635_v58 = vld [vmem:[%s2429_s7 + $0x1b0] sm:$0xf0] }
  0x46   : > { %v1809_v26 = vld [vmem:[%s2429_s7 + $0x300] sm:$0xf]  ;;  %v2039_v27 = vld [vmem:[%s2429_s7 + $0x30c] sm:$0xf0]  ;;  %v1682_v36 = vor.u32 %v2007_v25, %v1681_v23  ;;  %1033 = vmatpush.bf16.msra.mxu0 %v1426_v31  ;;  %v2025_v62 = vld [vmem:[%s2429_s7 + $0x2a4] sm:$0xf]  ;;  %v1638_v12 = vor.u32 %v1993_v57, %v1635_v58 }
  0x47   : > { %v1810_v39 = vor.u32 %v2039_v27, %v1809_v26  ;;  %1047 = vmatpush.bf16.msra.mxu1 %v1554_v35  ;;  %v248_v53 = vld [vmem:[#allocation3 + $0x10] sm:$0xff]  ;;  %v2057_v0 = vld [vmem:[%s2429_s7 + $0x3a4] sm:$0xf]  ;;  %v249_v3 = vld [vmem:[#allocation3 + $0x18] sm:$0xff] }
  0x48   : > { %1061 = vmatpush.bf16.msra.mxu2 %v1682_v36  ;;  %v252_v54 = vld [vmem:[#allocation3 + $0x30] sm:$0xff]  ;;  %v253_v4 = vld [vmem:[#allocation3 + $0x38] sm:$0xff]  ;;  %v246_v6 = vld [vmem:[#allocation3] sm:$0xff] }
  0x49   : > { %1075 = vmatpush.bf16.msra.mxu3 %v1810_v39  ;;  %v2519_v59 = vpack.c.bf16 %v252_v54, %v248_v53  ;;  %v1763_v63 = vld [vmem:[%s2429_s7 + $0x2b0] sm:$0xf0]  ;;  %v2526_v5 = vpack.c.bf16 %v253_v4, %v249_v3  ;;  %v250_v7 = vld [vmem:[#allocation3 + $0x20] sm:$0xff]  ;;  %v247_v8 = vld [vmem:[#allocation3 + $0x8] sm:$0xff] }
  0x4a   : > { %1082 = vmatpush.bf16.msrb.mxu0 %v1542_v40  ;;  %v1891_v2 = vld [vmem:[%s2429_s7 + $0x3b0] sm:$0xf0]  ;;  %v2528_v10 = vpack.c.bf16 %v250_v7, %v246_v6  ;;  %v251_v11 = vld [vmem:[#allocation3 + $0x28] sm:$0xff]  ;;  %v1766_v13 = vor.u32 %v2025_v62, %v1763_v63  ;;  %v1957_v14 = vld [vmem:[%s2429_s7 + $0x84] sm:$0xf] }
  0x4b   : > { %1096 = vmatpush.bf16.msrb.mxu1 %v1670_v43  ;;  %1062 = vmatmul.bf16.vlgmr.msra.gmra.mxu2 %v2519_v59  ;;  %v1491_v15 = vld [vmem:[%s2429_s7 + $0x90] sm:$0xf0]  ;;  %v1989_v16 = vld [vmem:[%s2429_s7 + $0x184] sm:$0xf]  ;;  %v2533_v17 = vpack.c.bf16 %v251_v11, %v247_v8  ;;  %v1894_v18 = vor.u32 %v2057_v0, %v1891_v2  ;;  %v1545_v11 = vld [vmem:[%s2429_s7 + $0xe8] sm:$0xf] }
  0x4c   : > { %1110 = vmatpush.bf16.msrb.mxu2 %v1798_v44  ;;  %v1619_v19 = vld [vmem:[%s2429_s7 + $0x190] sm:$0xf0]  ;;  %v2021_v20 = vld [vmem:[%s2429_s7 + $0x284] sm:$0xf]  ;;  %1034 = vmatmul.bf16.vlgmr.msra.gmra.mxu0 %v2528_v10  ;;  %v1494_v24 = vor.u32 %v1957_v14, %v1491_v15  ;;  %v2004_v15 = vld [vmem:[%s2429_s7 + $0x1f4] sm:$0xf0] }
  0x4d   : > { %1124 = vmatpush.bf16.msrb.mxu3 %v1926_v48  ;;  %v1747_v21 = vld [vmem:[%s2429_s7 + $0x290] sm:$0xf0]  ;;  %v2053_v22 = vld [vmem:[%s2429_s7 + $0x384] sm:$0xf]  ;;  %1048 = vmatmul.bf16.vlgmr.msra.gmra.mxu1 %v2533_v17  ;;  %v1622_v25 = vor.u32 %v1989_v16, %v1619_v19  ;;  %v1801_v16 = vld [vmem:[%s2429_s7 + $0x2e8] sm:$0xf] }
  0x4e   : > { %1083 = vmatpush.bf16.msrb.mxu0 %v1526_v55  ;;  %v1875_v23 = vld [vmem:[%s2429_s7 + $0x390] sm:$0xf0]  ;;  %1076 = vmatmul.bf16.vlgmr.msra.gmra.mxu3 %v2526_v5  ;;  %v1750_v26 = vor.u32 %v2021_v20, %v1747_v21  ;;  %v1953_v27 = vld [vmem:[%s2429_s7 + $0x64] sm:$0xf]  ;;  %v1929_v21 = vld [vmem:[%s2429_s7 + $0x3e8] sm:$0xf] }
  0x4f   : > { %1097 = vmatpush.bf16.msrb.mxu1 %v1654_v60  ;;  %v1475_v28 = vld [vmem:[%s2429_s7 + $0x70] sm:$0xf0]  ;;  %v1985_v29 = vld [vmem:[%s2429_s7 + $0x164] sm:$0xf]  ;;  %v1878_v30 = vor.u32 %v2053_v22, %v1875_v23  ;;  %v2068_v22 = vld [vmem:[%s2429_s7 + $0x3f4] sm:$0xf0] }
  0x50   : > { %1111 = vmatpush.bf16.msrb.mxu2 %v1782_v61  ;;  %v1603_v31 = vld [vmem:[%s2429_s7 + $0x170] sm:$0xf0]  ;;  %v2017_v32 = vld [vmem:[%s2429_s7 + $0x264] sm:$0xf]  ;;  %v1478_v36 = vor.u32 %v1953_v27, %v1475_v28  ;;  %v1529_v27 = vld [vmem:[%s2429_s7 + $0xc8] sm:$0xf] }
  0x51   : > { %1125 = vmatpush.bf16.msrb.mxu3 %v1910_v1  ;;  %v1731_v33 = vld [vmem:[%s2429_s7 + $0x270] sm:$0xf0]  ;;  %v2049_v34 = vld [vmem:[%s2429_s7 + $0x364] sm:$0xf]  ;;  %v1606_v37 = vor.u32 %v1985_v29, %v1603_v31  ;;  %v1968_v28 = vld [vmem:[%s2429_s7 + $0xd4] sm:$0xf0] }
  0x52   : > { %1084 = vmatpush.bf16.msrb.mxu0 %v1510_v9  ;;  %v1859_v35 = vld [vmem:[%s2429_s7 + $0x370] sm:$0xf0]  ;;  %v1734_v38 = vor.u32 %v2017_v32, %v1731_v33  ;;  %v1949_v39 = vld [vmem:[%s2429_s7 + $0x44] sm:$0xf]  ;;  %v1657_v29 = vld [vmem:[%s2429_s7 + $0x1c8] sm:$0xf] }
  0x53   : > { %1098 = vmatpush.bf16.msrb.mxu1 %v1638_v12  ;;  %v1459_v40 = vld [vmem:[%s2429_s7 + $0x50] sm:$0xf0]  ;;  %v1981_v41 = vld [vmem:[%s2429_s7 + $0x144] sm:$0xf]  ;;  %v1862_v42 = vor.u32 %v2049_v34, %v1859_v35  ;;  %v1972_v12 = vld [vmem:[%s2429_s7 + $0xf4] sm:$0xf0] }
  0x54   : > { %1112 = vmatpush.bf16.msrb.mxu2 %v1766_v13  ;;  %v1587_v43 = vld [vmem:[%s2429_s7 + $0x150] sm:$0xf0]  ;;  %v2013_v44 = vld [vmem:[%s2429_s7 + $0x244] sm:$0xf]  ;;  %v1462_v48 = vor.u32 %v1949_v39, %v1459_v40  ;;  %v1673_v13 = vld [vmem:[%s2429_s7 + $0x1e8] sm:$0xf] }
  0x55   : > { %1126 = vmatpush.bf16.msrb.mxu3 %v1894_v18  ;;  %v1715_v45 = vld [vmem:[%s2429_s7 + $0x250] sm:$0xf0]  ;;  %v2045_v46 = vld [vmem:[%s2429_s7 + $0x344] sm:$0xf]  ;;  %v1590_v49 = vor.u32 %v1981_v41, %v1587_v43  ;;  %v2036_v18 = vld [vmem:[%s2429_s7 + $0x2f4] sm:$0xf0] }
  0x56   : > { %1085 = vmatpush.bf16.msrb.mxu0 %v1494_v24  ;;  %v1843_v47 = vld [vmem:[%s2429_s7 + $0x350] sm:$0xf0]  ;;  %v1718_v50 = vor.u32 %v2013_v44, %v1715_v45  ;;  %v1945_v51 = vld [vmem:[%s2429_s7 + $0x24] sm:$0xf]  ;;  %v1546_v24 = vor.u32 %v1972_v12, %v1545_v11  ;;  %v2000_v31 = vld [vmem:[%s2429_s7 + $0x1d4] sm:$0xf0] }
  0x57   : > { %1099 = vmatpush.bf16.msrb.mxu1 %v1622_v25  ;;  %v1443_v52 = vld [vmem:[%s2429_s7 + $0x30] sm:$0xf0]  ;;  %v1977_v53 = vld [vmem:[%s2429_s7 + $0x124] sm:$0xf]  ;;  %v1846_v54 = vor.u32 %v2045_v46, %v1843_v47  ;;  %v1674_v25 = vor.u32 %v2004_v15, %v1673_v13  ;;  %v1785_v32 = vld [vmem:[%s2429_s7 + $0x2c8] sm:$0xf] }
  0x58   : > { %1113 = vmatpush.bf16.msrb.mxu2 %v1750_v26  ;;  %v1571_v55 = vld [vmem:[%s2429_s7 + $0x130] sm:$0xf0]  ;;  %v2009_v56 = vld [vmem:[%s2429_s7 + $0x224] sm:$0xf]  ;;  %v1446_v61 = vor.u32 %v1945_v51, %v1443_v52  ;;  %v1802_v26 = vor.u32 %v2036_v18, %v1801_v16  ;;  %v2032_v33 = vld [vmem:[%s2429_s7 + $0x2d4] sm:$0xf0] }
  0x59   : > { %1127 = vmatpush.bf16.msrb.mxu3 %v1878_v30  ;;  %v1699_v57 = vld [vmem:[%s2429_s7 + $0x230] sm:$0xf0]  ;;  %v2041_v58 = vld [vmem:[%s2429_s7 + $0x324] sm:$0xf]  ;;  %v1574_v0 = vor.u32 %v1977_v53, %v1571_v55  ;;  %v1930_v30 = vor.u32 %v2068_v22, %v1929_v21  ;;  %v1913_v34 = vld [vmem:[%s2429_s7 + $0x3c8] sm:$0xf] }
  0x5a   : > { %1086 = vmatpush.bf16.msrb.mxu0 %v1478_v36  ;;  %v1827_v60 = vld [vmem:[%s2429_s7 + $0x330] sm:$0xf0]  ;;  %v1941_v62 = vld [vmem:[%s2429_s7 + $0x4] sm:$0xf]  ;;  %v1702_v1 = vor.u32 %v2009_v56, %v1699_v57  ;;  %v2064_v35 = vld [vmem:[%s2429_s7 + $0x3d4] sm:$0xf0]  ;;  %v1530_v36 = vor.u32 %v1968_v28, %v1529_v27 }
  0x5b   : > { %1100 = vmatpush.bf16.msrb.mxu1 %v1606_v37  ;;  %v1427_v63 = vld [vmem:[%s2429_s7 + $0x10] sm:$0xf0]  ;;  %v1973_v2 = vld [vmem:[%s2429_s7 + $0x104] sm:$0xf]  ;;  %v1830_v6 = vor.u32 %v2041_v58, %v1827_v60  ;;  %v1658_v37 = vor.u32 %v2000_v31, %v1657_v29  ;;  %v1513_v39 = vld [vmem:[%s2429_s7 + $0xa8] sm:$0xf] }
  0x5c   : > { %1114 = vmatpush.bf16.msrb.mxu2 %v1734_v38  ;;  %v1555_v3 = vld [vmem:[%s2429_s7 + $0x110] sm:$0xf0]  ;;  %v2005_v4 = vld [vmem:[%s2429_s7 + $0x204] sm:$0xf]  ;;  %v1430_v14 = vor.u32 %v1941_v62, %v1427_v63  ;;  %v1786_v38 = vor.u32 %v2032_v33, %v1785_v32  ;;  %v1964_v40 = vld [vmem:[%s2429_s7 + $0xb4] sm:$0xf0] }
  0x5d   : > { %1128 = vmatpush.bf16.msrb.mxu3 %v1862_v42  ;;  %v1683_v7 = vld [vmem:[%s2429_s7 + $0x210] sm:$0xf0]  ;;  %v2037_v8 = vld [vmem:[%s2429_s7 + $0x304] sm:$0xf]  ;;  %v1558_v19 = vor.u32 %v1973_v2, %v1555_v3  ;;  %v1641_v41 = vld [vmem:[%s2429_s7 + $0x1a8] sm:$0xf]  ;;  %v1914_v42 = vor.u32 %v2064_v35, %v1913_v34 }
  0x5e   : > { %1087 = vmatpush.bf16.msrb.mxu0 %v1462_v48  ;;  %v1811_v9 = vld [vmem:[%s2429_s7 + $0x310] sm:$0xf0]  ;;  %v1686_v20 = vor.u32 %v2005_v4, %v1683_v7  ;;  %v1996_v43 = vld [vmem:[%s2429_s7 + $0x1b4] sm:$0xf0]  ;;  %v1769_v44 = vld [vmem:[%s2429_s7 + $0x2a8] sm:$0xf]  ;;  %v1514_v48 = vor.u32 %v1964_v40, %v1513_v39 }
  0x5f   : > { %1101 = vmatpush.bf16.msrb.mxu1 %v1590_v49  ;;  %v1814_v23 = vor.u32 %v2037_v8, %v1811_v9  ;;  %v2028_v45 = vld [vmem:[%s2429_s7 + $0x2b4] sm:$0xf0]  ;;  %v1897_v46 = vld [vmem:[%s2429_s7 + $0x3a8] sm:$0xf]  ;;  %v1642_v49 = vor.u32 %v1996_v43, %v1641_v41 }
  0x60   : > { %1115 = vmatpush.bf16.msrb.mxu2 %v1718_v50  ;;  %v2060_v47 = vld [vmem:[%s2429_s7 + $0x3b4] sm:$0xf0]  ;;  %v1770_v50 = vor.u32 %v2028_v45, %v1769_v44  ;;  %v1497_v51 = vld [vmem:[%s2429_s7 + $0x88] sm:$0xf] }
  0x61   : > { %1129 = vmatpush.bf16.msrb.mxu3 %v1846_v54  ;;  %v1960_v52 = vld [vmem:[%s2429_s7 + $0x94] sm:$0xf0]  ;;  %v1625_v53 = vld [vmem:[%s2429_s7 + $0x188] sm:$0xf]  ;;  %v1898_v54 = vor.u32 %v2060_v47, %v1897_v46 }
  0x62   : > { %1088 = vmatpush.bf16.msrb.mxu0 %v1446_v61  ;;  %v1992_v55 = vld [vmem:[%s2429_s7 + $0x194] sm:$0xf0]  ;;  %v1753_v56 = vld [vmem:[%s2429_s7 + $0x288] sm:$0xf]  ;;  %v1498_v61 = vor.u32 %v1960_v52, %v1497_v51  ;;  %v1675_v52 = vld [vmem:[%s2429_s7 + $0x1f8] sm:$0xf0] }
  0x63   : > { %1102 = vmatpush.bf16.msrb.mxu1 %v1574_v0  ;;  %v2024_v57 = vld [vmem:[%s2429_s7 + $0x294] sm:$0xf0]  ;;  %v1881_v58 = vld [vmem:[%s2429_s7 + $0x388] sm:$0xf]  ;;  %v1626_v62 = vor.u32 %v1992_v55, %v1625_v53  ;;  %v2034_v53 = vld [vmem:[%s2429_s7 + $0x2ec] sm:$0xf] }
  0x64   : > { %1116 = vmatpush.bf16.msrb.mxu2 %v1702_v1  ;;  %v2056_v60 = vld [vmem:[%s2429_s7 + $0x394] sm:$0xf0]  ;;  %v1754_v63 = vor.u32 %v2024_v57, %v1753_v56  ;;  %v1481_v0 = vld [vmem:[%s2429_s7 + $0x68] sm:$0xf]  ;;  %v2066_v57 = vld [vmem:[%s2429_s7 + $0x3ec] sm:$0xf] }
  0x65   : > { %1130 = vmatpush.bf16.msrb.mxu3 %v1830_v6  ;;  %v1956_v1 = vld [vmem:[%s2429_s7 + $0x74] sm:$0xf0]  ;;  %v1609_v2 = vld [vmem:[%s2429_s7 + $0x168] sm:$0xf]  ;;  %v1882_v3 = vor.u32 %v2056_v60, %v1881_v58  ;;  %v1931_v58 = vld [vmem:[%s2429_s7 + $0x3f8] sm:$0xf0] }
  0x66   : > { %1089 = vmatpush.bf16.msrb.mxu0 %v1430_v14  ;;  %v1988_v4 = vld [vmem:[%s2429_s7 + $0x174] sm:$0xf0]  ;;  %v1737_v6 = vld [vmem:[%s2429_s7 + $0x268] sm:$0xf]  ;;  %v1482_v11 = vor.u32 %v1956_v1, %v1481_v0  ;;  %v1966_v0 = vld [vmem:[%s2429_s7 + $0xcc] sm:$0xf] }
  0x67   : > { %1103 = vmatpush.bf16.msrb.mxu1 %v1558_v19  ;;  %v2020_v7 = vld [vmem:[%s2429_s7 + $0x274] sm:$0xf0]  ;;  %v1865_v8 = vld [vmem:[%s2429_s7 + $0x368] sm:$0xf]  ;;  %v1610_v12 = vor.u32 %v1988_v4, %v1609_v2  ;;  %v1531_v1 = vld [vmem:[%s2429_s7 + $0xd8] sm:$0xf0] }
  0x68   : > { %1117 = vmatpush.bf16.msrb.mxu2 %v1686_v20  ;;  %v2052_v9 = vld [vmem:[%s2429_s7 + $0x374] sm:$0xf0]  ;;  %v1738_v13 = vor.u32 %v2020_v7, %v1737_v6  ;;  %v1465_v14 = vld [vmem:[%s2429_s7 + $0x48] sm:$0xf]  ;;  %v1998_v2 = vld [vmem:[%s2429_s7 + $0x1cc] sm:$0xf] }
  0x69   : > { %1131 = vmatpush.bf16.msrb.mxu3 %v1814_v23  ;;  %1090 = vmatmul.bf16.vlgmr.msrb.gmra.mxu0 %v2528_v10  ;;  %v1952_v15 = vld [vmem:[%s2429_s7 + $0x54] sm:$0xf0]  ;;  %v1593_v16 = vld [vmem:[%s2429_s7 + $0x148] sm:$0xf]  ;;  %v1866_v18 = vor.u32 %v2052_v9, %v1865_v8  ;;  %v1659_v4 = vld [vmem:[%s2429_s7 + $0x1d8] sm:$0xf0] }
  0x6a   : > { %1138 = vmatpush.bf16.msra.mxu0 %v1546_v24  ;;  %1104 = vmatmul.bf16.vlgmr.msrb.gmra.mxu1 %v2533_v17  ;;  %v1984_v19 = vld [vmem:[%s2429_s7 + $0x154] sm:$0xf0]  ;;  %v1721_v20 = vld [vmem:[%s2429_s7 + $0x248] sm:$0xf]  ;;  %v1466_v24 = vor.u32 %v1952_v15, %v1465_v14  ;;  %v2030_v6 = vld [vmem:[%s2429_s7 + $0x2cc] sm:$0xf] }
  0x6b   : > { %1152 = vmatpush.bf16.msra.mxu1 %v1674_v25  ;;  %1118 = vmatmul.bf16.vlgmr.msrb.gmra.mxu2 %v2519_v59  ;;  %v2016_v21 = vld [vmem:[%s2429_s7 + $0x254] sm:$0xf0]  ;;  %v1849_v22 = vld [vmem:[%s2429_s7 + $0x348] sm:$0xf]  ;;  %v1594_v25 = vor.u32 %v1984_v19, %v1593_v16  ;;  %v1787_v7 = vld [vmem:[%s2429_s7 + $0x2d8] sm:$0xf0] }
  0x6c   : > { %1166 = vmatpush.bf16.msra.mxu2 %v1802_v26  ;;  %1132 = vmatmul.bf16.vlgmr.msrb.gmra.mxu3 %v2526_v5  ;;  %v2048_v23 = vld [vmem:[%s2429_s7 + $0x354] sm:$0xf0]  ;;  %v1722_v26 = vor.u32 %v2016_v21, %v1721_v20  ;;  %v1449_v27 = vld [vmem:[%s2429_s7 + $0x28] sm:$0xf]  ;;  %v2062_v8 = vld [vmem:[%s2429_s7 + $0x3cc] sm:$0xf] }
  0x6d   : > { %1180 = vmatpush.bf16.msra.mxu3 %v1930_v30  ;;  %v1948_v28 = vld [vmem:[%s2429_s7 + $0x34] sm:$0xf0]  ;;  %v1577_v29 = vld [vmem:[%s2429_s7 + $0x128] sm:$0xf]  ;;  %v1850_v30 = vor.u32 %v2048_v23, %v1849_v22  ;;  %v1915_v9 = vld [vmem:[%s2429_s7 + $0x3d8] sm:$0xf0] }
  0x6e   : > { %1139 = vmatpush.bf16.msra.mxu0 %v1530_v36  ;;  %v1980_v31 = vld [vmem:[%s2429_s7 + $0x134] sm:$0xf0]  ;;  %v1705_v32 = vld [vmem:[%s2429_s7 + $0x228] sm:$0xf]  ;;  %v1450_v36 = vor.u32 %v1948_v28, %v1449_v27  ;;  %v1962_v14 = vld [vmem:[%s2429_s7 + $0xac] sm:$0xf] }
  0x6f   : > { %1153 = vmatpush.bf16.msra.mxu1 %v1658_v37  ;;  %v2012_v33 = vld [vmem:[%s2429_s7 + $0x234] sm:$0xf0]  ;;  %v1833_v34 = vld [vmem:[%s2429_s7 + $0x328] sm:$0xf]  ;;  %v1578_v39 = vor.u32 %v1980_v31, %v1577_v29  ;;  %v1515_v15 = vld [vmem:[%s2429_s7 + $0xb8] sm:$0xf0] }
  0x70   : > { %1167 = vmatpush.bf16.msra.mxu2 %v1786_v38  ;;  %v2044_v35 = vld [vmem:[%s2429_s7 + $0x334] sm:$0xf0]  ;;  %v1433_v37 = vld [vmem:[%s2429_s7 + $0x8] sm:$0xf]  ;;  %v1706_v40 = vor.u32 %v2012_v33, %v1705_v32  ;;  %v1994_v16 = vld [vmem:[%s2429_s7 + $0x1ac] sm:$0xf] }
  0x71   : > { %1181 = vmatpush.bf16.msra.mxu3 %v1914_v42  ;;  %v1944_v38 = vld [vmem:[%s2429_s7 + $0x14] sm:$0xf0]  ;;  %v1561_v41 = vld [vmem:[%s2429_s7 + $0x108] sm:$0xf]  ;;  %v1834_v44 = vor.u32 %v2044_v35, %v1833_v34  ;;  %v1643_v19 = vld [vmem:[%s2429_s7 + $0x1b8] sm:$0xf0] }
  0x72   : > { %1140 = vmatpush.bf16.msra.mxu0 %v1514_v48  ;;  %v1976_v42 = vld [vmem:[%s2429_s7 + $0x114] sm:$0xf0]  ;;  %v1689_v43 = vld [vmem:[%s2429_s7 + $0x208] sm:$0xf]  ;;  %v1970_v48 = vld [vmem:[%s2429_s7 + $0xec] sm:$0xf]  ;;  %v1434_v51 = vor.u32 %v1944_v38, %v1433_v37 }
  0x73   : > { %1154 = vmatpush.bf16.msra.mxu1 %v1642_v49  ;;  %v2008_v45 = vld [vmem:[%s2429_s7 + $0x214] sm:$0xf0]  ;;  %v1817_v46 = vld [vmem:[%s2429_s7 + $0x308] sm:$0xf]  ;;  %v1547_v49 = vld [vmem:[%s2429_s7 + $0xf8] sm:$0xf0]  ;;  %v1562_v55 = vor.u32 %v1976_v42, %v1561_v41 }
  0x74   : > { %1168 = vmatpush.bf16.msra.mxu2 %v1770_v50  ;;  %v2040_v47 = vld [vmem:[%s2429_s7 + $0x314] sm:$0xf0]  ;;  %v2002_v50 = vld [vmem:[%s2429_s7 + $0x1ec] sm:$0xf]  ;;  %v1690_v56 = vor.u32 %v2008_v45, %v1689_v43  ;;  %v1771_v21 = vld [vmem:[%s2429_s7 + $0x2b8] sm:$0xf0] }
  0x75   : > { %1182 = vmatpush.bf16.msra.mxu3 %v1898_v54  ;;  %v1803_v54 = vld [vmem:[%s2429_s7 + $0x2f8] sm:$0xf0]  ;;  %v1818_v60 = vor.u32 %v2040_v47, %v1817_v46  ;;  %v2026_v20 = vld [vmem:[%s2429_s7 + $0x2ac] sm:$0xf] }
  0x76   : > { %1141 = vmatpush.bf16.msra.mxu0 %v1498_v61  ;;  %v1550_v61 = vor.u32 %v1970_v48, %v1547_v49  ;;  %v2058_v22 = vld [vmem:[%s2429_s7 + $0x3ac] sm:$0xf]  ;;  %v1899_v23 = vld [vmem:[%s2429_s7 + $0x3b8] sm:$0xf0] }
  0x77   : > { %1155 = vmatpush.bf16.msra.mxu1 %v1626_v62  ;;  %v1678_v62 = vor.u32 %v2002_v50, %v1675_v52  ;;  %v1958_v27 = vld [vmem:[%s2429_s7 + $0x8c] sm:$0xf]  ;;  %v1499_v28 = vld [vmem:[%s2429_s7 + $0x98] sm:$0xf0] }
  0x78   : > { %1169 = vmatpush.bf16.msra.mxu2 %v1754_v63  ;;  %v1806_v63 = vor.u32 %v2034_v53, %v1803_v54  ;;  %v1990_v29 = vld [vmem:[%s2429_s7 + $0x18c] sm:$0xf]  ;;  %v1627_v31 = vld [vmem:[%s2429_s7 + $0x198] sm:$0xf0] }
  0x79   : > { %1183 = vmatpush.bf16.msra.mxu3 %v1882_v3  ;;  %v1934_v3 = vor.u32 %v2066_v57, %v1931_v58  ;;  %v2022_v32 = vld [vmem:[%s2429_s7 + $0x28c] sm:$0xf]  ;;  %v1755_v33 = vld [vmem:[%s2429_s7 + $0x298] sm:$0xf0]  ;;  %v1630_v37 = vor.u32 %v1990_v29, %v1627_v31 }
  0x7a   : > { %1142 = vmatpush.bf16.msra.mxu0 %v1482_v11  ;;  %v1534_v11 = vor.u32 %v1966_v0, %v1531_v1  ;;  %v2054_v34 = vld [vmem:[%s2429_s7 + $0x38c] sm:$0xf]  ;;  %v1883_v35 = vld [vmem:[%s2429_s7 + $0x398] sm:$0xf0]  ;;  %v1758_v38 = vor.u32 %v2022_v32, %v1755_v33 }
  0x7b   : > { %1156 = vmatpush.bf16.msra.mxu1 %v1610_v12  ;;  %v1662_v12 = vor.u32 %v1998_v2, %v1659_v4  ;;  %v1986_v41 = vld [vmem:[%s2429_s7 + $0x16c] sm:$0xf]  ;;  %v1886_v42 = vor.u32 %v2054_v34, %v1883_v35  ;;  %v1611_v43 = vld [vmem:[%s2429_s7 + $0x178] sm:$0xf0] }
  0x7c   : > { %1170 = vmatpush.bf16.msra.mxu2 %v1738_v13  ;;  %v1790_v13 = vor.u32 %v2030_v6, %v1787_v7  ;;  %v1739_v45 = vld [vmem:[%s2429_s7 + $0x278] sm:$0xf0]  ;;  %v2050_v46 = vld [vmem:[%s2429_s7 + $0x36c] sm:$0xf]  ;;  %v1614_v49 = vor.u32 %v1986_v41, %v1611_v43 }
  0x7d   : > { %1184 = vmatpush.bf16.msra.mxu3 %v1866_v18  ;;  %v1918_v18 = vor.u32 %v2062_v8, %v1915_v9  ;;  %v1867_v47 = vld [vmem:[%s2429_s7 + $0x378] sm:$0xf0]  ;;  %v1982_v53 = vld [vmem:[%s2429_s7 + $0x14c] sm:$0xf] }
  0x7e   : > { %1143 = vmatpush.bf16.msra.mxu0 %v1466_v24  ;;  %v1518_v24 = vor.u32 %v1962_v14, %v1515_v15  ;;  %v1467_v52 = vld [vmem:[%s2429_s7 + $0x58] sm:$0xf0]  ;;  %v1870_v54 = vor.u32 %v2050_v46, %v1867_v47  ;;  %v2046_v58 = vld [vmem:[%s2429_s7 + $0x34c] sm:$0xf] }
  0x7f   : > { %1157 = vmatpush.bf16.msra.mxu1 %v1594_v25  ;;  %v1646_v25 = vor.u32 %v1994_v16, %v1643_v19  ;;  %v1723_v57 = vld [vmem:[%s2429_s7 + $0x258] sm:$0xf0]  ;;  %v1946_v0 = vld [vmem:[%s2429_s7 + $0x2c] sm:$0xf] }
  0x80   : > { %1171 = vmatpush.bf16.msra.mxu2 %v1722_v26  ;;  %v1774_v26 = vor.u32 %v2026_v20, %v1771_v21  ;;  %v1451_v1 = vld [vmem:[%s2429_s7 + $0x38] sm:$0xf0]  ;;  %v1978_v2 = vld [vmem:[%s2429_s7 + $0x12c] sm:$0xf] }
  0x81   : > { %1185 = vmatpush.bf16.msra.mxu3 %v1850_v30  ;;  %v1902_v30 = vor.u32 %v2058_v22, %v1899_v23  ;;  %v1579_v4 = vld [vmem:[%s2429_s7 + $0x138] sm:$0xf0]  ;;  %v2010_v6 = vld [vmem:[%s2429_s7 + $0x22c] sm:$0xf] }
  0x82   : > { %1144 = vmatpush.bf16.msra.mxu0 %v1450_v36  ;;  %v1502_v36 = vor.u32 %v1958_v27, %v1499_v28  ;;  %v1707_v7 = vld [vmem:[%s2429_s7 + $0x238] sm:$0xf0]  ;;  %v2042_v8 = vld [vmem:[%s2429_s7 + $0x32c] sm:$0xf] }
  0x83   : > { %1158 = vmatpush.bf16.msra.mxu1 %v1578_v39  ;;  %v1954_v39 = vld [vmem:[%s2429_s7 + $0x6c] sm:$0xf]  ;;  %v1835_v9 = vld [vmem:[%s2429_s7 + $0x338] sm:$0xf0] }
  0x84   : > { %1172 = vmatpush.bf16.msra.mxu2 %v1706_v40  ;;  %v1483_v40 = vld [vmem:[%s2429_s7 + $0x78] sm:$0xf0]  ;;  %v1942_v14 = vld [vmem:[%s2429_s7 + $0xc] sm:$0xf] }
  0x85   : > { %1186 = vmatpush.bf16.msra.mxu3 %v1834_v44  ;;  %v2018_v44 = vld [vmem:[%s2429_s7 + $0x26c] sm:$0xf]  ;;  %v1486_v48 = vor.u32 %v1954_v39, %v1483_v40  ;;  %v1435_v15 = vld [vmem:[%s2429_s7 + $0x18] sm:$0xf0] }
  0x86   : > { %1145 = vmatpush.bf16.msra.mxu0 %v1434_v51  ;;  %v1742_v50 = vor.u32 %v2018_v44, %v1739_v45  ;;  %v1950_v51 = vld [vmem:[%s2429_s7 + $0x4c] sm:$0xf]  ;;  %v1563_v19 = vld [vmem:[%s2429_s7 + $0x118] sm:$0xf0] }
  0x87   : > { %1159 = vmatpush.bf16.msra.mxu1 %v1562_v55  ;;  %v1595_v55 = vld [vmem:[%s2429_s7 + $0x158] sm:$0xf0]  ;;  %v1974_v16 = vld [vmem:[%s2429_s7 + $0x10c] sm:$0xf] }
  0x88   : > { %1173 = vmatpush.bf16.msra.mxu2 %v1690_v56  ;;  %v2014_v56 = vld [vmem:[%s2429_s7 + $0x24c] sm:$0xf]  ;;  %v1691_v21 = vld [vmem:[%s2429_s7 + $0x218] sm:$0xf0] }
  0x89   : > { %1187 = vmatpush.bf16.msra.mxu3 %v1818_v60  ;;  %1146 = vmatmul.bf16.vlgmr.msra.gmra.mxu0 %v2528_v10  ;;  %v1851_v60 = vld [vmem:[%s2429_s7 + $0x358] sm:$0xf0]  ;;  %v2006_v20 = vld [vmem:[%s2429_s7 + $0x20c] sm:$0xf] }
  0x8a   : > { %1194 = vmatpush.bf16.msrb.mxu0 %v1550_v61  ;;  %1160 = vmatmul.bf16.vlgmr.msra.gmra.mxu1 %v2533_v17  ;;  %v1470_v61 = vor.u32 %v1950_v51, %v1467_v52  ;;  %v2038_v22 = vld [vmem:[%s2429_s7 + $0x30c] sm:$0xf]  ;;  %v1819_v23 = vld [vmem:[%s2429_s7 + $0x318] sm:$0xf0] }
  0x8b   : > { %1208 = vmatpush.bf16.msrb.mxu1 %v1678_v62  ;;  %1174 = vmatmul.bf16.vlgmr.msra.gmra.mxu2 %v2519_v59  ;;  %v1598_v62 = vor.u32 %v1982_v53, %v1595_v55  ;;  %v1822_v27 = vor.u32 %v2038_v22, %v1819_v23 }
  0x8c   : > { %1222 = vmatpush.bf16.msrb.mxu2 %v1806_v63  ;;  %1188 = vmatmul.bf16.vlgmr.msra.gmra.mxu3 %v2526_v5  ;;  %v1726_v63 = vor.u32 %v2014_v56, %v1723_v57 }
  0x8d   : > { %1236 = vmatpush.bf16.msrb.mxu3 %v1934_v3  ;;  %v1854_v3 = vor.u32 %v2046_v58, %v1851_v60 }
  0x8e   : > { %1195 = vmatpush.bf16.msrb.mxu0 %v1534_v11  ;;  %v1454_v11 = vor.u32 %v1946_v0, %v1451_v1 }
  0x8f   : > { %1209 = vmatpush.bf16.msrb.mxu1 %v1662_v12  ;;  %v1582_v12 = vor.u32 %v1978_v2, %v1579_v4 }
  0x90   : > { %1223 = vmatpush.bf16.msrb.mxu2 %v1790_v13  ;;  %v1710_v13 = vor.u32 %v2010_v6, %v1707_v7 }
  0x91   : > { %1237 = vmatpush.bf16.msrb.mxu3 %v1918_v18  ;;  %v1838_v18 = vor.u32 %v2042_v8, %v1835_v9 }
  0x92   : > { %1196 = vmatpush.bf16.msrb.mxu0 %v1518_v24  ;;  %v1438_v24 = vor.u32 %v1942_v14, %v1435_v15 }
  0x93   : > { %1210 = vmatpush.bf16.msrb.mxu1 %v1646_v25  ;;  %v1566_v25 = vor.u32 %v1974_v16, %v1563_v19 }
  0x94   : > { %1224 = vmatpush.bf16.msrb.mxu2 %v1774_v26  ;;  %v1694_v26 = vor.u32 %v2006_v20, %v1691_v21 }
  0x95   : > { %1238 = vmatpush.bf16.msrb.mxu3 %v1902_v30 }
  0x96   : > { %1197 = vmatpush.bf16.msrb.mxu0 %v1502_v36 }
  0x97   : > { %1211 = vmatpush.bf16.msrb.mxu1 %v1630_v37 }
  0x98   : > { %1225 = vmatpush.bf16.msrb.mxu2 %v1758_v38 }
  0x99   : > { %1239 = vmatpush.bf16.msrb.mxu3 %v1886_v42 }
  0x9a   : > { %1198 = vmatpush.bf16.msrb.mxu0 %v1486_v48 }
  0x9b   : > { %1212 = vmatpush.bf16.msrb.mxu1 %v1614_v49 }
  0x9c   : > { %1226 = vmatpush.bf16.msrb.mxu2 %v1742_v50 }
  0x9d   : > { %1240 = vmatpush.bf16.msrb.mxu3 %v1870_v54 }
  0x9e   : > { %1199 = vmatpush.bf16.msrb.mxu0 %v1470_v61 }
  0x9f   : > { %1213 = vmatpush.bf16.msrb.mxu1 %v1598_v62 }
  0xa0   : > { %1227 = vmatpush.bf16.msrb.mxu2 %v1726_v63 }
  0xa1   : > { %1241 = vmatpush.bf16.msrb.mxu3 %v1854_v3 }
  0xa2   : > { %1200 = vmatpush.bf16.msrb.mxu0 %v1454_v11 }
  0xa3   : > { %1214 = vmatpush.bf16.msrb.mxu1 %v1582_v12 }
  0xa4   : > { %1228 = vmatpush.bf16.msrb.mxu2 %v1710_v13 }
  0xa5   : > { %1242 = vmatpush.bf16.msrb.mxu3 %v1838_v18 }
  0xa6   : > { %1201 = vmatpush.bf16.msrb.mxu0 %v1438_v24 }
  0xa7   : > { %1215 = vmatpush.bf16.msrb.mxu1 %v1566_v25 }
  0xa8   : > { %1229 = vmatpush.bf16.msrb.mxu2 %v1694_v26 }
  0xa9   : > { %1243 = vmatpush.bf16.msrb.mxu3 %v1822_v27  ;;  %1202 = vmatmul.bf16.vlgmr.msrb.gmra.mxu0 %v2528_v10 }
  0xaa   : > { %1216 = vmatmul.bf16.vlgmr.msrb.gmra.mxu1 %v2533_v17 }
  0xab   : > { %1230 = vmatmul.bf16.vlgmr.msrb.gmra.mxu2 %v2519_v59 }
  0xac   : > { %1244 = vmatmul.bf16.vlgmr.msrb.gmra.mxu3 %v2526_v5 }
  0xc9   : > { %v1035_v28 = vpop.f32.mrf.mxu0 }
  0xca   : > { %v1049_v29 = vpop.f32.mrf.mxu1 }
  0xcb   : > { %v1050_v36 = vadd.f32 %v1049_v29, %v1035_v28 }
  0xce   : > { %v1063_v30 = vpop.f32.mrf.mxu2 }
  0xcf   : > { %v1064_v10 = vadd.f32 %v1063_v30, %v1050_v36 }
  0xd1   : > { %v1077_v31 = vpop.f32.mrf.mxu3  ;;  %v1037_v32 = vpop.f32.mrf.mxu0 }
  0xd2   : > { %v1051_v33 = vpop.f32.mrf.mxu1  ;;  %v1078_v41 = vadd.f32 %v1077_v31, %v1064_v10 }
  0xd3   : > { %v1052_v5 = vadd.f32 %v1051_v33, %v1037_v32 }
  0xd6   : > { %v1065_v34 = vpop.f32.mrf.mxu2 }
  0xd7   : > { %v1066_v47 = vadd.f32 %v1065_v34, %v1052_v5 }
  0xd9   : > { %v1079_v35 = vpop.f32.mrf.mxu3 }
  0xda   : > { %v1080_v51 = vadd.f32 %v1079_v35, %v1066_v47 }
  0xe6   : > { %v1091_v37 = vpop.f32.mrf.mxu0 }
  0xe7   : > { %v1105_v38 = vpop.f32.mrf.mxu1 }
  0xe8   : > { %v1106_v39 = vadd.f32 %v1105_v38, %v1091_v37 }
  0xee   : > { %v1119_v40 = vpop.f32.mrf.mxu2  ;;  %v1093_v43 = vpop.f32.mrf.mxu0 }
  0xef   : > { %v1120_v17 = vadd.f32 %v1119_v40, %v1106_v39  ;;  %v1133_v59 = vpop.f32.mrf.mxu3  ;;  %v1107_v44 = vpop.f32.mrf.mxu1 }
  0xf0   : > { %v1108_v46 = vadd.f32 %v1107_v44, %v1093_v43 }
  0xf1   : > { %v1134_v42 = vadd.f32 %v1133_v59, %v1120_v17 }
  0xf3   : > { %v1277_v45 = vpack.c.bf16 %v1134_v42, %v1078_v41 }
  0xf5   : > { %1281 = vst [vmem:[%s2716_s19] sm:$0xff] %v1277_v45 }
  0xf6   : > { %v1121_v48 = vpop.f32.mrf.mxu2 }
  0xf7   : > { %v1122_v49 = vadd.f32 %v1121_v48, %v1108_v46  ;;  %v1135_v50 = vpop.f32.mrf.mxu3 }
  0xf9   : > { %v1136_v52 = vadd.f32 %v1135_v50, %v1122_v49 }
  0xfb   : > { %v1279_v53 = vpack.c.bf16 %v1136_v52, %v1080_v51 }
  0xfd   : > { %1283 = vst [vmem:[%s2716_s19 + $0x10] sm:$0xff] %v1279_v53 }
 0x106   : > { %v1147_v54 = vpop.f32.mrf.mxu0 }
 0x107   : > { %v1161_v55 = vpop.f32.mrf.mxu1 }
 0x108   : > { %v1162_v1 = vadd.f32 %v1161_v55, %v1147_v54 }
 0x10e   : > { %v1175_v56 = vpop.f32.mrf.mxu2  ;;  %v1149_v58 = vpop.f32.mrf.mxu0 }
 0x10f   : > { %v1189_v57 = vpop.f32.mrf.mxu3  ;;  %v1163_v60 = vpop.f32.mrf.mxu1  ;;  %v1176_v3 = vadd.f32 %v1175_v56, %v1162_v1 }
 0x110   : > { %v1164_v9 = vadd.f32 %v1163_v60, %v1149_v58 }
 0x111   : > { %v1190_v8 = vadd.f32 %v1189_v57, %v1176_v3 }
 0x116   : > { %v1177_v61 = vpop.f32.mrf.mxu2 }
 0x117   : > { %v1191_v62 = vpop.f32.mrf.mxu3  ;;  %v1178_v15 = vadd.f32 %v1177_v61, %v1164_v9 }
 0x119   : > { %v1192_v21 = vadd.f32 %v1191_v62, %v1178_v15 }
 0x126   : > { %v1203_v63 = vpop.f32.mrf.mxu0 }
 0x127   : > { %v1217_v0 = vpop.f32.mrf.mxu1 }
 0x128   : > { %v1218_v2 = vadd.f32 %v1217_v0, %v1203_v63 }
 0x12e   : > { %v1231_v4 = vpop.f32.mrf.mxu2  ;;  %v1205_v12 = vpop.f32.mrf.mxu0 }
 0x12f   : > { %v1232_v6 = vadd.f32 %v1231_v4, %v1218_v2  ;;  %v1245_v7 = vpop.f32.mrf.mxu3  ;;  %v1219_v13 = vpop.f32.mrf.mxu1 }
 0x130   : > { %v1220_v16 = vadd.f32 %v1219_v13, %v1205_v12 }
 0x131   : > { %v1246_v11 = vadd.f32 %v1245_v7, %v1232_v6 }
 0x133   : > { %v1278_v14 = vpack.c.bf16 %v1246_v11, %v1190_v8 }
 0x135   : > { %1282 = vst [vmem:[%s2716_s19 + $0x8] sm:$0xff] %v1278_v14 }
 0x136   : > { %v1233_v18 = vpop.f32.mrf.mxu2 }
 0x137   : > { %v1234_v19 = vadd.f32 %v1233_v18, %v1220_v16  ;;  %v1247_v20 = vpop.f32.mrf.mxu3 }
 0x139   : > { %v1248_v22 = vadd.f32 %v1247_v20, %v1234_v19 }
 0x13b   : > { %v1280_v23 = vpack.c.bf16 %v1248_v22, %v1192_v21 }
 0x13d   : > { %1284 = vst [vmem:[%s2716_s19 + $0x18] sm:$0xff] %v1280_v23 }
 0x13e   : > { %2238 = shalt.err (!%p2235_p12)
}
 0x13f   : > { %s2305_s30 = smov 256   ;;  %s2306_s6 = smov 768  }
 0x140   : > { %s2307_s7 = smov 16  }
 0x141   : > { %2076 = dma.vmem_to_hbm [thread:$0]  (%p2401_p3), %s1302_s22, 512, %s1304_s23, %s1286_s12, %s2305_s30, %s2306_s6, %s2307_s7  }
 0x142 PF: > { %p2093_p13 = scmp.ge.s32.totalorder %s2297_s14, 2  ;;  %s1318_s17 = sand.u32 1, %s2277_s9  }
 0x143   : > { %s1319_s19 = scalar_lea.sflag [#allocation5], %s1318_s17 }
 0x144   : > { %p2087_p0 = pnand %p2093_p13, %p2372_p6 }
 0x146   : > { %p2088_p5 = pneg %p2087_p0 }
 0x148   : > { %2272 = dma.done.wait (%p2088_p5), %s1319_s19, 512  }
 0x149   : > { %2274 = vsyncadd (%p2088_p5), %s1319_s19, 4294966784  ;;  %s19_s14 = sadd.s32 1, %s2297_s14   ;;  %s2770_s9 = smov %s2281_s10 }
 0x14a   : > { %p16_p7 = scmp.ge.s32.totalorder %s19_s14, 5   ;;  %s2771_s10 = smov %s2285_s11 }
 0x14b   : > { %s2772_s11 = smov %s2410_s8  ;;  %s2773_s12 = smov %s2293_s13 }
 0x14c   : > { %s2774_s13 = smov %s2776_s29  ;;  %18 = sbr.rel (!%p16_p7) target bundleno = 7 (0x7), region = 87 }
 0x151   :  { %1325 = vsyncpa [#allocation4], 1 }
 0x152   :  { %1327 = vsyncpa [#allocation4 + $0x1], 1 }
 0x153   :  { %1328 = vsyncpa [#allocation7], 1 }
 0x154   :  { %1330 = vsyncpa [#allocation7 + $0x1], 1 }
 0x155   :  { %1331 = vsyncpa [#allocation5], 1 }
 0x156   :  { %1333 = vsyncpa [#allocation5 + $0x1], 1 }

</bundles_post_ra>
